<compile_context>
chip_gen: v5e
topology: v5e:2x2
jax: 0.10.0
libtpu: 0.0.40
codegen_flags: <defaults>
</compile_context>

<pallas_src>
import math
from functools import partial

import jax
import jax.numpy as jnp
from jax.experimental import pallas as pl
from jax.experimental.pallas import tpu as pltpu


def _sign(x):
    # torch.sign semantics (0 -> 0), written as selects to keep lowering simple.
    return jnp.where(x > 0, 1.0, jnp.where(x < 0, -1.0, 0.0))


def _inv_weight_norm(w_t):
    # w_t: (Cin, Cout) pre-transposed weight -> (1, Cout) inverse norm.
    # Sublane reduction + single EUP rsqrt; result is lane-dense and
    # broadcast-ready against the (rows, Cout) matmul output.
    return jax.lax.rsqrt(jnp.sum(w_t * w_t, axis=0, keepdims=True) + 1e-6)


def _fc0_fc2_kernel(x0_ref, x_ref, w0t_ref, w2t_ref, drop_ref,
                    b_ref, h_ref, *, binarize):
    # fc0 (hyper-bias path): (N_O, N_I*E) @ (N_I*E, Cout)
    w0t = w0t_ref[...]
    b = jnp.dot(x0_ref[...], w0t, preferred_element_type=jnp.float32)
    b = b * _inv_weight_norm(w0t)
    if binarize:
        b = _sign(b)
    b_ref[...] = b.astype(b_ref.dtype)

    # fc2 + dropout: (N, E) @ (E, Cout*E), then elementwise dropout multiplier.
    w2t = w2t_ref[...]
    h = jnp.dot(x_ref[...], w2t, preferred_element_type=jnp.float32)
    h = h * _inv_weight_norm(w2t)
    h_ref[...] = (h * drop_ref[...]).astype(h_ref.dtype)


def _fc3_kernel(h_ref, w3t_ref, o_ref, *, binarize):
    # fc3: (row_block, E) @ (E, Cin*k*k)
    w3t = w3t_ref[...]
    o = jnp.dot(h_ref[...], w3t, preferred_element_type=jnp.float32)
    o = o * _inv_weight_norm(w3t)
    if binarize:
        o = _sign(o)
    o_ref[...] = o.astype(o_ref.dtype)


def static_hypernetwork_forward(embed_vec, w0, w2, w3, *,
                                in_channels, out_channels, kernel_size,
                                drop_scale=None, binarize=True,
                                reweight=False):
    """Pallas forward of StaticHypernetwork_Parrallel.

    embed_vec  : (N_O, N_I, E) f32
    w0         : (out_channels, N_I*E)                    fc0 weight
    w2         : (out_channels*E, E)                      fc2 weight
    w3         : (in_channels*k*k, E)                     fc3 weight
    drop_scale : optional (N_O*N_I, out_channels*E) dropout multiplier
                 (keep_mask / keep_prob); None -> no dropout.
    returns (weight, bias):
        weight : (N_O*out_channels, N_I*in_channels, k, k)
        bias   : (N_O*out_channels, 1)
    """
    N_O, N_I, E = embed_vec.shape
    N = N_O * N_I
    C0 = out_channels
    C2 = out_channels * E
    C3 = in_channels * kernel_size * kernel_size
    f32 = jnp.float32

    # Wrapper-side layout plumbing: flatten inputs, pre-transpose weights so
    # the kernels never transpose through the XLU.
    x0 = embed_vec.reshape(N_O, N_I * E).astype(f32)
    x = embed_vec.reshape(N, E).astype(f32)
    w0_t = jnp.transpose(w0).astype(f32)        # (N_I*E, C0)
    w2_t = jnp.transpose(w2).astype(f32)        # (E, C2)
    w3_t = jnp.transpose(w3).astype(f32)        # (E, C3)

    # TODO(synk): F.dropout uses torch RNG; here the (deterministic) keep-mask
    # is generated host-side with jax.random and passed in as a multiplier.
    if drop_scale is None:
        drop_scale = jnp.ones((N, C2), f32)

    # ---- kernel 1: fc0 + fc2 + dropout (single step, whole arrays in VMEM) --
    b_out, h = pl.pallas_call(
        partial(_fc0_fc2_kernel, binarize=binarize),
        out_shape=(jax.ShapeDtypeStruct((N_O, C0), f32),
                   jax.ShapeDtypeStruct((N, C2), f32)),
        grid=(1,),
        in_specs=[
            pl.BlockSpec((N_O, N_I * E), lambda i: (0, 0)),
            pl.BlockSpec((N, E), lambda i: (0, 0)),
            pl.BlockSpec((N_I * E, C0), lambda i: (0, 0)),
            pl.BlockSpec((E, C2), lambda i: (0, 0)),
            pl.BlockSpec((N, C2), lambda i: (0, 0)),
        ],
        out_specs=(pl.BlockSpec((N_O, C0), lambda i: (0, 0)),
                   pl.BlockSpec((N, C2), lambda i: (0, 0))),
        compiler_params=pltpu.CompilerParams(
            dimension_semantics=("arbitrary",)),
    )(x0, x, w0_t, w2_t, drop_scale)

    # (N, Cout*E) -> (N*Cout, E): row-major relayout done by XLA, not in-kernel.
    rows = N * out_channels
    h2 = h.reshape(rows, E)

    # ---- kernel 2: fc3 (+ sign), row-tiled; "parallel" grid axis lets the
    # two v7x TensorCores split large problems (single step at small sizes).
    if rows > 512 and rows % 256 == 0:
        row_block = 256
    else:
        row_block = rows
    n_blocks = rows // row_block

    w_out = pl.pallas_call(
        partial(_fc3_kernel, binarize=binarize),
        out_shape=jax.ShapeDtypeStruct((rows, C3), f32),
        grid=(n_blocks,),
        in_specs=[
            pl.BlockSpec((row_block, E), lambda i: (i, 0)),
            pl.BlockSpec((E, C3), lambda i: (0, 0)),
        ],
        out_specs=pl.BlockSpec((row_block, C3), lambda i: (i, 0)),
        compiler_params=pltpu.CompilerParams(
            dimension_semantics=("parallel",)),
    )(h2, w3_t)

    # Final layout plumbing (sign commutes with reshape/permute).
    weight = w_out.reshape(N_O, N_I, out_channels, in_channels,
                           kernel_size, kernel_size)
    weight = jnp.transpose(weight, (0, 2, 1, 3, 4, 5)).reshape(
        N_O * out_channels, N_I * in_channels, kernel_size, kernel_size)
    bias = b_out.reshape(N_O * out_channels, 1)

    if reweight:
        s = weight.shape
        weight = math.sqrt(2.0 / (s[0] * s[1] * s[2] * s[3])) * weight
    return weight, bias


def _reference(embed_vec, w0, w2, w3, drop_scale, *,
               in_channels, out_channels, kernel_size):
    hi = jax.lax.Precision.HIGHEST

    def wn_linear(x, w):
        norm = jnp.sqrt(jnp.sum(w * w, axis=1, keepdims=True) + 1e-6)
        return jnp.dot(x, w.T, precision=hi) / norm.T

    N_O, N_I, E = embed_vec.shape
    N = N_O * N_I
    k = kernel_size
    b_pre = wn_linear(embed_vec.reshape(N_O, N_I * E), w0)
    b_pre = b_pre.reshape(N_O * out_channels, 1)
    h = wn_linear(embed_vec.reshape(N, E), w2) * drop_scale
    w_pre = wn_linear(h.reshape(N * out_channels, E), w3)
    w_pre = w_pre.reshape(N_O, N_I, out_channels, in_channels, k, k)
    w_pre = jnp.transpose(w_pre, (0, 2, 1, 3, 4, 5)).reshape(
        N_O * out_channels, N_I * in_channels, k, k)
    return jnp.sign(w_pre), jnp.sign(b_pre), w_pre, b_pre


if __name__ == "__main__":
    key = jax.random.PRNGKey(0)
    k_e, k0, k2, k3, kd = jax.random.split(key, 5)

    # Small shapes consistent with the module defaults
    # (embed_vec_dim=64, in/out channels 16, kernel 3x3, z_num=(1, N_I)).
    E = 64
    Cin, Cout, K = 16, 16, 3
    N_O, N_I = 4, 2
    N = N_O * N_I

    embed = jax.random.normal(k_e, (N_O, N_I, E), jnp.float32)

    # Deterministic WeightNormlinear init (reset_parameters with factor=4).
    def init_weight(k, cout, cin):
        stdv = 4.0 / math.sqrt(cin)
        return jax.random.uniform(k, (cout, cin), jnp.float32, -stdv, stdv)

    w0 = init_weight(k0, Cout, N_I * E)          # fc0: (16, 128)
    w2 = init_weight(k2, Cout * E, E)            # fc2: (1024, 64)
    w3 = init_weight(k3, Cin * K * K, E)         # fc3: (144, 64)

    # Training-mode F.dropout(p=0.5) keep-mask, shared with the reference so
    # the check is deterministic.
    p = 0.5
    keep = jax.random.bernoulli(kd, 1.0 - p, (N, Cout * E))
    drop_scale = keep.astype(jnp.float32) / (1.0 - p)

    weight, bias = static_hypernetwork_forward(
        embed, w0, w2, w3, in_channels=Cin, out_channels=Cout, kernel_size=K,
        drop_scale=drop_scale, binarize=True)
    weight, bias = jax.block_until_ready((weight, bias))

    ref_w, ref_b, ref_w_pre, ref_b_pre = _reference(
        embed, w0, w2, w3, drop_scale,
        in_channels=Cin, out_channels=Cout, kernel_size=K)

    assert weight.shape == (N_O * Cout, N_I * Cin, K, K)
    assert bias.shape == (N_O * Cout, 1)

    # Signs are compared except where the pre-sign value is borderline zero
    # (MXU vs XLA f32 rounding could legitimately flip the sign there).
    tol = 1e-3
    ok_w = jnp.all((weight == ref_w) | (jnp.abs(ref_w_pre) < tol))
    ok_b = jnp.all((bias == ref_b) | (jnp.abs(ref_b_pre) < tol))
    assert bool(ok_w) and bool(ok_b), "binarized output mismatch vs reference"

    # Also verify pre-binarization numerics via the binarize=False path.
    w_pre, b_pre = static_hypernetwork_forward(
        embed, w0, w2, w3, in_channels=Cin, out_channels=Cout, kernel_size=K,
        drop_scale=drop_scale, binarize=False)
    w_pre, b_pre = jax.block_until_ready((w_pre, b_pre))
    assert jnp.allclose(w_pre, ref_w_pre, atol=1e-4, rtol=1e-4)
    assert jnp.allclose(b_pre, ref_b_pre, atol=1e-4, rtol=1e-4)

    print("KERNEL_OK")
</pallas_src>

<mosaic_0001>
module attributes {stable_mosaic.version = 11 : i64} {
  func.func @_fc0_fc2_kernel(%arg0: i32, %arg1: memref<4x128xf32, #tpu.memory_space<vmem>>, %arg2: memref<8x64xf32, #tpu.memory_space<vmem>>, %arg3: memref<128x16xf32, #tpu.memory_space<vmem>>, %arg4: memref<64x1024xf32, #tpu.memory_space<vmem>>, %arg5: memref<8x1024xf32, #tpu.memory_space<vmem>>, %arg6: memref<4x16xf32, #tpu.memory_space<vmem>>, %arg7: memref<8x1024xf32, #tpu.memory_space<vmem>>) attributes {dimension_semantics = [#tpu.dimension_semantics<arbitrary>], iteration_bounds = array<i64: 1>, scalar_prefetch = 0 : i64, scratch_operands = 0 : i64, tpu.core_type = #tpu.core_type<tc>, window_params = [{pipeline_mode = #tpu.pipeline_mode<synchronous>, transform_indices = @transform_0, window_bounds = array<i64: 4, 128>}, {pipeline_mode = #tpu.pipeline_mode<synchronous>, transform_indices = @transform_1, window_bounds = array<i64: 8, 64>}, {pipeline_mode = #tpu.pipeline_mode<synchronous>, transform_indices = @transform_2, window_bounds = array<i64: 128, 16>}, {pipeline_mode = #tpu.pipeline_mode<synchronous>, transform_indices = @transform_3, window_bounds = array<i64: 64, 1024>}, {pipeline_mode = #tpu.pipeline_mode<synchronous>, transform_indices = @transform_4, window_bounds = array<i64: 8, 1024>}, {pipeline_mode = #tpu.pipeline_mode<synchronous>, transform_indices = @transform_5, window_bounds = array<i64: 4, 16>}, {pipeline_mode = #tpu.pipeline_mode<synchronous>, transform_indices = @transform_6, window_bounds = array<i64: 8, 1024>}]} {
    %c0 = arith.constant 0 : index
    %c0_0 = arith.constant 0 : index
    %0 = vector.load %arg3[%c0, %c0_0] : memref<128x16xf32, #tpu.memory_space<vmem>>, vector<128x16xf32>
    %c0_1 = arith.constant 0 : index
    %c0_2 = arith.constant 0 : index
    %1 = vector.load %arg1[%c0_1, %c0_2] : memref<4x128xf32, #tpu.memory_space<vmem>>, vector<4x128xf32>
    %cst = arith.constant dense<0.000000e+00> : vector<4x16xf32>
    %2 = tpu.matmul %1, %0, %cst {dimension_numbers = #tpu.dot_dimension_numbers<[1], [0], [0], [1], [0, 0, 1, 1], [], []>} : vector<4x128xf32>, vector<128x16xf32>, vector<4x16xf32> -> vector<4x16xf32>
    %3 = arith.mulf %0, %0 : vector<128x16xf32>
    %cst_3 = arith.constant dense<0.000000e+00> : vector<16xf32>
    %4 = vector.multi_reduction <add>, %3, %cst_3 [0] : vector<128x16xf32> to vector<16xf32>
    %5 = vector.shape_cast %4 : vector<16xf32> to vector<1x16xf32>
    %cst_4 = arith.constant 9.99999997E-7 : f32
    %6 = vector.broadcast %cst_4 : f32 to vector<1x16xf32>
    %7 = arith.addf %5, %6 : vector<1x16xf32>
    %8 = math.rsqrt %7 : vector<1x16xf32>
    %9 = vector.broadcast %8 : vector<1x16xf32> to vector<4x16xf32>
    %10 = arith.mulf %2, %9 : vector<4x16xf32>
    %cst_5 = arith.constant 0.000000e+00 : f32
    %11 = vector.broadcast %cst_5 : f32 to vector<4x16xf32>
    %12 = arith.cmpf ogt, %10, %11 : vector<4x16xf32>
    %cst_6 = arith.constant 0.000000e+00 : f32
    %13 = vector.broadcast %cst_6 : f32 to vector<4x16xf32>
    %14 = arith.cmpf olt, %10, %13 : vector<4x16xf32>
    %cst_7 = arith.constant -1.000000e+00 : f32
    %cst_8 = arith.constant 0.000000e+00 : f32
    %15 = vector.broadcast %cst_7 : f32 to vector<4x16xf32>
    %16 = vector.broadcast %cst_8 : f32 to vector<4x16xf32>
    %17 = arith.select %14, %15, %16 : vector<4x16xi1>, vector<4x16xf32>
    %cst_9 = arith.constant 1.000000e+00 : f32
    %18 = vector.broadcast %cst_9 : f32 to vector<4x16xf32>
    %19 = arith.select %12, %18, %17 : vector<4x16xi1>, vector<4x16xf32>
    %c0_10 = arith.constant 0 : index
    %c0_11 = arith.constant 0 : index
    %20 = vector.load %arg6[%c0_10, %c0_11] : memref<4x16xf32, #tpu.memory_space<vmem>>, vector<4x16xf32>
    tpu.vector_store %arg6[%c0_10, %c0_11], %19 {strides = array<i32>} : memref<4x16xf32, #tpu.memory_space<vmem>>, vector<4x16xf32>,
    %c0_12 = arith.constant 0 : index
    %c0_13 = arith.constant 0 : index
    %21 = vector.load %arg4[%c0_12, %c0_13] : memref<64x1024xf32, #tpu.memory_space<vmem>>, vector<64x1024xf32>
    %c0_14 = arith.constant 0 : index
    %c0_15 = arith.constant 0 : index
    %22 = vector.load %arg2[%c0_14, %c0_15] : memref<8x64xf32, #tpu.memory_space<vmem>>, vector<8x64xf32>
    %cst_16 = arith.constant dense<0.000000e+00> : vector<8x1024xf32>
    %23 = tpu.matmul %22, %21, %cst_16 {dimension_numbers = #tpu.dot_dimension_numbers<[1], [0], [0], [1], [0, 0, 1, 1], [], []>} : vector<8x64xf32>, vector<64x1024xf32>, vector<8x1024xf32> -> vector<8x1024xf32>
    %24 = arith.mulf %21, %21 : vector<64x1024xf32>
    %cst_17 = arith.constant dense<0.000000e+00> : vector<1024xf32>
    %25 = vector.multi_reduction <add>, %24, %cst_17 [0] : vector<64x1024xf32> to vector<1024xf32>
    %26 = vector.shape_cast %25 : vector<1024xf32> to vector<1x1024xf32>
    %cst_18 = arith.constant 9.99999997E-7 : f32
    %27 = vector.broadcast %cst_18 : f32 to vector<1x1024xf32>
    %28 = arith.addf %26, %27 : vector<1x1024xf32>
    %29 = math.rsqrt %28 : vector<1x1024xf32>
    %30 = vector.broadcast %29 : vector<1x1024xf32> to vector<8x1024xf32>
    %31 = arith.mulf %23, %30 : vector<8x1024xf32>
    %c0_19 = arith.constant 0 : index
    %c0_20 = arith.constant 0 : index
    %32 = vector.load %arg5[%c0_19, %c0_20] : memref<8x1024xf32, #tpu.memory_space<vmem>>, vector<8x1024xf32>
    %33 = arith.mulf %31, %32 : vector<8x1024xf32>
    %c0_21 = arith.constant 0 : index
    %c0_22 = arith.constant 0 : index
    %34 = vector.load %arg7[%c0_21, %c0_22] : memref<8x1024xf32, #tpu.memory_space<vmem>>, vector<8x1024xf32>
    tpu.vector_store %arg7[%c0_21, %c0_22], %33 {strides = array<i32>} : memref<8x1024xf32, #tpu.memory_space<vmem>>, vector<8x1024xf32>,
    return
  }
  func.func @transform_0(%arg0: i32) -> (i32, i32) {
    %c0_i32 = arith.constant 0 : i32
    %c0_i32_0 = arith.constant 0 : i32
    %c0_i32_1 = arith.constant 0 : i32
    return %c0_i32, %c0_i32_0 : i32, i32
  }
  func.func @transform_1(%arg0: i32) -> (i32, i32) {
    %c0_i32 = arith.constant 0 : i32
    %c0_i32_0 = arith.constant 0 : i32
    %c0_i32_1 = arith.constant 0 : i32
    return %c0_i32, %c0_i32_0 : i32, i32
  }
  func.func @transform_2(%arg0: i32) -> (i32, i32) {
    %c0_i32 = arith.constant 0 : i32
    %c0_i32_0 = arith.constant 0 : i32
    %c0_i32_1 = arith.constant 0 : i32
    return %c0_i32, %c0_i32_0 : i32, i32
  }
  func.func @transform_3(%arg0: i32) -> (i32, i32) {
    %c0_i32 = arith.constant 0 : i32
    %c0_i32_0 = arith.constant 0 : i32
    %c0_i32_1 = arith.constant 0 : i32
    return %c0_i32, %c0_i32_0 : i32, i32
  }
  func.func @transform_4(%arg0: i32) -> (i32, i32) {
    %c0_i32 = arith.constant 0 : i32
    %c0_i32_0 = arith.constant 0 : i32
    %c0_i32_1 = arith.constant 0 : i32
    return %c0_i32, %c0_i32_0 : i32, i32
  }
  func.func @transform_5(%arg0: i32) -> (i32, i32) {
    %c0_i32 = arith.constant 0 : i32
    %c0_i32_0 = arith.constant 0 : i32
    %c0_i32_1 = arith.constant 0 : i32
    return %c0_i32, %c0_i32_0 : i32, i32
  }
  func.func @transform_6(%arg0: i32) -> (i32, i32) {
    %c0_i32 = arith.constant 0 : i32
    %c0_i32_0 = arith.constant 0 : i32
    %c0_i32_1 = arith.constant 0 : i32
    return %c0_i32, %c0_i32_0 : i32, i32
  }
}

</mosaic_0001>

<bundles_post_ra>
// kernel: tpu_custom_call.1
= control target key start
LH: loop header
LB: loop body
LE: loop exit
PB: predicated region body
PF: predicated region fallthrough
CT: control target
= control target key end

     0   :  { %12 = vsyncpa [#allocation3], 0  ;;  %s1327_s0 = inlined_call_operand.vmem [shape: f32[4,128], index: 0, kind: input, shape index: {}]   ;;  %s1328_s1 = inlined_call_operand.vmem [shape: f32[8,64], index: 1, kind: input, shape index: {}]   ;;  %s1329_s2 = inlined_call_operand.vmem [shape: f32[128,16], index: 2, kind: input, shape index: {}]   ;;  %s1330_s3 = inlined_call_operand.hbm [shape: f32[64,1024], index: 3, kind: input, shape index: {}]   ;;  %s1331_s4 = inlined_call_operand.vmem [shape: f32[8,1024], index: 4, kind: input, shape index: {}]   ;;  %s1332_s5 = inlined_call_operand.hbm [shape: f32[4,16], index: 5, kind: output, shape index: {0}]   ;;  %s1333_s6 = inlined_call_operand.hbm [shape: f32[8,1024], index: 6, kind: output, shape index: {1}]  }
   0x1   :  { %13 = vsyncpa [#allocation4], 0 }
   0x2   :  { %14 = vsyncpa [#allocation7], 0  ;;  %s25_s23 = sshll.u32 %s1330_s3, 4  ;;  %s809_s24 = smov [#allocation2]   ;;  %s26_s23 = int_to_ptr.hbm [resolvable:$true] %s25_s23 }
   0x3   :  { %s27_s25 = sshll.u32 %s809_s24, 4  ;;  %s810_s26 = smov 1024   ;;  %s28_s25 = int_to_ptr.vmem [resolvable:$true] %s27_s25 }
   0x4   :  { %s811_s27 = smov 64  }
   0x5   :  { %33 = dma.hbm_to_vmem [thread:$0]  %s26_s23, 8192, %s28_s25, [#allocation3], %s810_s26, %s810_s26, %s811_s27  }
   0x6   :  { %803 = dma.done.wait [#allocation3], 8192  }
   0x7   :  { %804 = vsyncadd [#allocation3], 4294959104  ;;  %v856_v0 = vld [vmem:[%s1329_s2 + $0x78] sm:$0xff]  ;;  %v205_v1 = vld [vmem:[#allocation2 + $0x1c0] sm:$0xff]  ;;  %vm93_vm0 = vcmask 130048   ;;  %vm214_vm1 = vcmask 523264  }
   0x8   :  { %v861_v2 = vld [vmem:[%s1329_s2 + $0x70] sm:$0xff]  ;;  %57 = vmatpush.msra.mxu0 %v856_v0  ;;  %226 = vmatpush.msra.mxu1 %v205_v1  ;;  %v197_v3 = vld [vmem:[#allocation2 + $0x180] sm:$0xff]  ;;  %v867_v4 = vld [vmem:[%s1329_s2 + $0x68] sm:$0xff]  ;;  %v881_v14 = vmul.f32 %v205_v1, %v205_v1  ;;  %s812_s17 = smov [#allocation5]   ;;  %s673_s21 = sshll.u32 %s1332_s5, 4  ;;  %s674_s21 = int_to_ptr.hbm [resolvable:$true] %s673_s21 }
   0x9   :  { %v189_v5 = vld [vmem:[#allocation2 + $0x140] sm:$0xff]  ;;  %v206_v7 = vld [vmem:[#allocation2 + $0x1c8] sm:$0xff]  ;;  %v878_v9 = vld [vmem:[%s1329_s2 + $0x58] sm:$0xff]  ;;  %v883_v15 = vmul.f32 %v197_v3, %v197_v3  ;;  %s1253_s18 = sshll.u32 %s812_s17, 4  ;;  %s814_s7 = smov [#allocation6]   ;;  %s672_s18 = int_to_ptr.vmem [resolvable:$true] %s1253_s18 }
   0xa   :  { %58 = vmatpush.msra.mxu0 %v861_v2  ;;  %227 = vmatpush.msra.mxu1 %v197_v3  ;;  %v873_v6 = vld [vmem:[%s1329_s2 + $0x60] sm:$0xff]  ;;  %v207_v10 = vld [vmem:[#allocation2 + $0x1d0] sm:$0xff]  ;;  %v198_v12 = vld [vmem:[#allocation2 + $0x188] sm:$0xff]  ;;  %v885_v19 = vmul.f32 %v189_v5, %v189_v5  ;;  %v894_v30 = vmul.f32 %v206_v7, %v206_v7  ;;  %s682_s3 = sshll.u32 %s814_s7, 4  ;;  %s684_s10 = sshll.u32 %s1333_s6, 4  ;;  %s683_s3 = int_to_ptr.vmem [resolvable:$true] %s682_s3  ;;  %s685_s10 = int_to_ptr.hbm [resolvable:$true] %s684_s10 }
   0xb   :  { %v181_v8 = vld [vmem:[#allocation2 + $0x100] sm:$0xff]  ;;  %246 = vmatpush.msra.mxu2 %v206_v7  ;;  %v199_v13 = vld [vmem:[#allocation2 + $0x190] sm:$0xff]  ;;  %266 = vmatpush.msra.mxu3 %v207_v10  ;;  %v190_v18 = vld [vmem:[#allocation2 + $0x148] sm:$0xff]  ;;  %v896_v31 = vmul.f32 %v207_v10, %v207_v10  ;;  %v903_v36 = vmul.f32 %v198_v12, %v198_v12 }
   0xc   :  { %59 = vmatpush.msra.mxu0 %v867_v4  ;;  %228 = vmatpush.msra.mxu1 %v189_v5  ;;  %v173_v11 = vld [vmem:[#allocation2 + $0xc0] sm:$0xff]  ;;  %v410_v20 = vmul.f32 %v181_v8, %v181_v8  ;;  %v191_v22 = vld [vmem:[#allocation2 + $0x150] sm:$0xff]  ;;  %v182_v24 = vld [vmem:[#allocation2 + $0x108] sm:$0xff]  ;;  %v908_v39 = vmul.f32 %v199_v13, %v199_v13  ;;  %v912_v41 = vmul.f32 %v190_v18, %v190_v18 }
   0xd   :  { %v165_v16 = vld [vmem:[#allocation2 + $0x80] sm:$0xff]  ;;  %247 = vmatpush.msra.mxu2 %v198_v12  ;;  %v402_v25 = vmul.f32 %v173_v11, %v173_v11  ;;  %v50_v26 = vld [vmem:[%s1329_s2 + $0x50] sm:$0xff]  ;;  %267 = vmatpush.msra.mxu3 %v199_v13  ;;  %v49_v32 = vld [vmem:[%s1329_s2 + $0x48] sm:$0xff]  ;;  %v917_v45 = vmul.f32 %v191_v22, %v191_v22  ;;  %v921_v49 = vmul.f32 %v182_v24, %v182_v24 }
   0xe   :  { %v157_v17 = vld [vmem:[#allocation2 + $0x40] sm:$0xff]  ;;  %60 = vmatpush.msra.mxu0 %v873_v6  ;;  %229 = vmatpush.msra.mxu1 %v181_v8  ;;  %v394_v27 = vmul.f32 %v165_v16, %v165_v16  ;;  %v892_v29 = vmul.f32 %v50_v26, %v50_v26  ;;  %v183_v33 = vld [vmem:[#allocation2 + $0x110] sm:$0xff]  ;;  %v174_v34 = vld [vmem:[#allocation2 + $0xc8] sm:$0xff]  ;;  %v901_v35 = vmul.f32 %v49_v32, %v49_v32 }
   0xf   :  { %v386_v21 = vmul.f32 %v157_v17, %v157_v17  ;;  %v149_v23 = vld [vmem:[#allocation2] sm:$0xff]  ;;  %248 = vmatpush.msra.mxu2 %v190_v18  ;;  %268 = vmatpush.msra.mxu3 %v191_v22  ;;  %v47_v42 = vld [vmem:[%s1329_s2 + $0x38] sm:$0xff]  ;;  %v175_v43 = vld [vmem:[#allocation2 + $0xd0] sm:$0xff]  ;;  %v923_v50 = vmul.f32 %v183_v33, %v183_v33  ;;  %v403_v8 = vmul.f32 %v174_v34, %v174_v34 }
  0x10   :  { %v378_v28 = vmul.f32 %v149_v23, %v149_v23  ;;  %61 = vmatpush.msra.mxu0 %v878_v9  ;;  %230 = vmatpush.msra.mxu1 %v173_v11  ;;  %v48_v37 = vld [vmem:[%s1329_s2 + $0x40] sm:$0xff]  ;;  %v166_v44 = vld [vmem:[#allocation2 + $0x88] sm:$0xff]  ;;  %v919_v47 = vmul.f32 %v47_v42, %v47_v42  ;;  %v208_v48 = vld [vmem:[#allocation2 + $0x1d8] sm:$0xff]  ;;  %v404_v10 = vmul.f32 %v175_v43, %v175_v43 }
  0x11   :  { %249 = vmatpush.msra.mxu2 %v182_v24  ;;  %v910_v40 = vmul.f32 %v48_v37, %v48_v37  ;;  %269 = vmatpush.msra.mxu3 %v183_v33  ;;  %v925_v51 = vmul.f32 %v208_v48, %v208_v48  ;;  %v167_v52 = vld [vmem:[#allocation2 + $0x90] sm:$0xff]  ;;  %v158_v53 = vld [vmem:[#allocation2 + $0x48] sm:$0xff]  ;;  %v200_v61 = vld [vmem:[#allocation2 + $0x198] sm:$0xff]  ;;  %v395_v62 = vmul.f32 %v166_v44, %v166_v44 }
  0x12   :  { %v442_v38 = vadd.f32 %v386_v21, %v378_v28  ;;  %62 = vmatpush.msra.mxu0 %v50_v26  ;;  %231 = vmatpush.msra.mxu1 %v165_v16  ;;  %v159_v54 = vld [vmem:[#allocation2 + $0x50] sm:$0xff]  ;;  %v387_v57 = vmul.f32 %v158_v53, %v158_v53  ;;  %v150_v59 = vld [vmem:[#allocation2 + $0x8] sm:$0xff]  ;;  %v396_v5 = vmul.f32 %v167_v52, %v167_v52  ;;  %v192_v11 = vld [vmem:[#allocation2 + $0x158] sm:$0xff] }
  0x13   :  { %250 = vmatpush.msra.mxu2 %v174_v34  ;;  %v46_v56 = vld [vmem:[%s1329_s2 + $0x30] sm:$0xff]  ;;  %270 = vmatpush.msra.mxu3 %v175_v43  ;;  %v388_v58 = vmul.f32 %v159_v54, %v159_v54  ;;  %v379_v63 = vmul.f32 %v150_v59, %v150_v59  ;;  %v933_v16 = vmul.f32 %v200_v61, %v200_v61  ;;  %v201_v33 = vld [vmem:[#allocation2 + $0x1a0] sm:$0xff]  ;;  %v41_v34 = vld [vmem:[%s1329_s2 + $0x8] sm:$0xff] }
  0x14   :  { %v443_v46 = vadd.f32 %v442_v38, %v394_v27  ;;  %63 = vmatpush.msra.mxu0 %v49_v32  ;;  %232 = vmatpush.msra.mxu1 %v157_v17  ;;  %v930_v60 = vmul.f32 %v46_v56, %v46_v56  ;;  %v151_v1 = vld [vmem:[#allocation2 + $0x10] sm:$0xff]  ;;  %v45_v17 = vld [vmem:[%s1329_s2 + $0x28] sm:$0xff]  ;;  %v942_v22 = vmul.f32 %v192_v11, %v192_v11  ;;  %v176_v38 = vld [vmem:[#allocation2 + $0xd8] sm:$0xff] }
  0x15   :  { %251 = vmatpush.msra.mxu2 %v166_v44  ;;  %271 = vmatpush.msra.mxu3 %v167_v52  ;;  %v380_v7 = vmul.f32 %v151_v1, %v151_v1  ;;  %v455_v12 = vadd.f32 %v387_v57, %v379_v63  ;;  %v940_v21 = vmul.f32 %v45_v17, %v45_v17  ;;  %v42_v32 = vld [vmem:[%s1329_s2 + $0x10] sm:$0xff]  ;;  %v160_v44 = vld [vmem:[#allocation2 + $0x58] sm:$0xff] }
  0x16   :  { %v444_v55 = vadd.f32 %v443_v46, %v402_v25  ;;  %64 = vmatpush.msra.mxu0 %v48_v37  ;;  %233 = vmatpush.msra.mxu1 %v149_v23  ;;  %v184_v23 = vld [vmem:[#allocation2 + $0x118] sm:$0xff]  ;;  %v947_v25 = vld [vmem:[#allocation2 + $0x1e8] sm:$0xff]  ;;  %v78_v43 = vmul.f32 %v41_v34, %v41_v34 }
  0x17   :  { %252 = vmatpush.msra.mxu2 %v158_v53  ;;  %272 = vmatpush.msra.mxu3 %v159_v54  ;;  %v468_v18 = vadd.f32 %v388_v58, %v380_v7  ;;  %v456_v24 = vadd.f32 %v455_v12, %v395_v62  ;;  %v389_v53 = vmul.f32 %v160_v44, %v160_v44  ;;  %v193_v54 = vld [vmem:[#allocation2 + $0x160] sm:$0xff]  ;;  %v152_v62 = vld [vmem:[#allocation2 + $0x18] sm:$0xff] }
  0x18   :  { %v445_v3 = vadd.f32 %v444_v55, %v410_v20  ;;  %286 = vmatpush.msrb.mxu1 %v208_v48  ;;  %65 = vmatpush.msra.mxu0 %v47_v42  ;;  %v938_v20 = vld [vmem:[#allocation2 + $0x1e0] sm:$0xff]  ;;  %v959_v42 = vld [vmem:[#allocation2 + $0x1a8] sm:$0xff]  ;;  %v43_v48 = vld [vmem:[%s1329_s2 + $0x18] sm:$0xff]  ;;  %v95_v58 = vsel %vm93_vm0, %v78_v43, 0.0  ;;  %v405_v7 = vmul.f32 %v176_v38, %v176_v38 }
  0x19   :  { %253 = vmatpush.msra.mxu2 %v150_v59  ;;  %273 = vmatpush.msra.mxu3 %v151_v1  ;;  %v469_v28 = vadd.f32 %v468_v18, %v396_v5  ;;  %v457_v37 = vadd.f32 %v456_v24, %v403_v8  ;;  %v40_v55 = vld [vmem:[%s1329_s2] sm:$0xff]  ;;  %v194_v59 = vld [vmem:[#allocation2 + $0x168] sm:$0xff]  ;;  %v413_v18 = vmul.f32 %v184_v23, %v184_v23 }
  0x1a   :  { %v446_v13 = vadd.f32 %v445_v3, %v885_v19  ;;  %287 = vmatpush.msrb.mxu1 %v200_v61  ;;  %66 = vmatpush.msra.mxu0 %v46_v56  ;;  %v44_v19 = vld [vmem:[%s1329_s2 + $0x20] sm:$0xff]  ;;  %v80_v56 = vmul.f32 %v43_v48, %v43_v48  ;;  %v77_v61 = vmul.f32 %v40_v55, %v40_v55 }
  0x1b   :  { %v950_v27 = vmul.f32 %v44_v19, %v44_v19  ;;  %306 = vmatpush.msrb.mxu2 %v938_v20  ;;  %v470_v52 = vadd.f32 %v469_v28, %v404_v10  ;;  %326 = vmatpush.msrb.mxu3 %v947_v25  ;;  %v458_v57 = vadd.f32 %v457_v37, %v921_v49  ;;  %v978_v3 = vld [vmem:[%s1328_s1] sm:$0xff]  ;;  %v993_v37 = vld [vmem:[#allocation2 + $0x1f8] sm:$0xff] }
  0x1c   :  { %v447_v26 = vadd.f32 %v446_v13, %v883_v15  ;;  %288 = vmatpush.msrb.mxu1 %v192_v11  ;;  %67 = vmatpush.msra.mxu0 %v45_v17  ;;  %v79_v15 = vmul.f32 %v42_v32, %v42_v32  ;;  %v381_v49 = vmul.f32 %v152_v62, %v152_v62  ;;  %v185_v10 = vld [vmem:[#allocation2 + $0x120] sm:$0xff]  ;;  %v186_v17 = vld [vmem:[#allocation2 + $0x128] sm:$0xff] }
  0x1d   :  { %307 = vmatpush.msrb.mxu2 %v201_v33  ;;  %v471_v63 = vadd.f32 %v470_v52, %v923_v50  ;;  %327 = vmatpush.msrb.mxu3 %v959_v42  ;;  %v459_v5 = vadd.f32 %v458_v57, %v912_v41  ;;  %v94_v50 = vsel %vm93_vm0, %v77_v61, 0.0  ;;  %v988_v41 = vmul.f32 %v938_v20, %v938_v20  ;;  %v169_v52 = vld [vmem:[#allocation2 + $0xa0] sm:$0xff] }
  0x1e   :  { %v962_v46 = vadd.f32 %v447_v26, %v881_v14  ;;  %289 = vmatpush.msrb.mxu1 %v184_v23  ;;  %68 = vmatpush.msra.mxu0 %v44_v19  ;;  %v168_v14 = vld [vmem:[#allocation2 + $0x98] sm:$0xff]  ;;  %v97_v8 = vsel %vm93_vm0, %v79_v15, 0.0  ;;  %v96_v12 = vadd.f32 %v95_v58, %v94_v50  ;;  %v481_v13 = vadd.f32 %v389_v53, %v381_v49  ;;  %v1037_v58 = vld [vmem:[#allocation2 + $0x170] sm:$0xff] }
  0x1f   :  { %v397_v1 = vmul.f32 %v168_v14, %v168_v14  ;;  %308 = vmatpush.msrb.mxu2 %v193_v54  ;;  %v472_v11 = vadd.f32 %v471_v63, %v917_v45  ;;  %328 = vmatpush.msrb.mxu3 %v194_v59  ;;  %v99_v19 = vsel %vm93_vm0, %v80_v56, 0.0  ;;  %v460_v24 = vadd.f32 %v459_v5, %v903_v36  ;;  %v153_v5 = vld [vmem:[#allocation2 + $0x20] sm:$0xff] }
  0x20   :  { %290 = vmatpush.msrb.mxu1 %v176_v38  ;;  %69 = vmatpush.msra.mxu0 %v43_v48  ;;  %v98_v26 = vadd.f32 %v97_v8, %v96_v12  ;;  %v101_v23 = vsel %vm93_vm0, %v950_v27, 0.0  ;;  %v1002_v20 = vmul.f32 %v947_v25, %v947_v25  ;;  %v178_v27 = vld [vmem:[#allocation2 + $0xe8] sm:$0xff]  ;;  %v103_v25 = vsel %vm93_vm0, %v940_v21, 0.0  ;;  %v1026_v48 = vld [vmem:[#allocation2 + $0x1b8] sm:$0xff] }
  0x21   :  { %699 = vmatmul.msk.f32.vlgmr.msra.gmra.mxu1 %vm214_vm1, %v978_v3  ;;  %v473_v45 = vadd.f32 %v472_v11, %v908_v39  ;;  %v482_v28 = vadd.f32 %v481_v13, %v397_v1  ;;  %309 = vmatpush.msrb.mxu2 %v185_v10  ;;  %v998_v36 = vadd.f32 %v460_v24, %v894_v30  ;;  %v1006_v39 = vld [vmem:[#allocation2 + $0x1f0] sm:$0xff]  ;;  %v177_v30 = vld [vmem:[#allocation2 + $0xe0] sm:$0xff]  ;;  %v170_v21 = vld [vmem:[#allocation2 + $0xa8] sm:$0xff]  ;;  %v107_v8 = vsel %vm93_vm0, %v919_v47, 0.0 }
  0x22   :  { %291 = vmatpush.msrb.mxu1 %v168_v14  ;;  %70 = vmatpush.msra.mxu0 %v42_v32  ;;  %v1004_v32 = vmul.f32 %v201_v33, %v201_v33  ;;  %v100_v15 = vadd.f32 %v99_v19, %v98_v26  ;;  %v1017_v33 = vmul.f32 %v959_v42, %v959_v42  ;;  %v161_v42 = vld [vmem:[#allocation2 + $0x60] sm:$0xff]  ;;  %v109_v19 = vsel %vm93_vm0, %v910_v40, 0.0  ;;  %v179_v26 = vld [vmem:[#allocation2 + $0xf0] sm:$0xff] }
  0x23   :  { %329 = vmatpush.msrb.mxu3 %v186_v17  ;;  %v1009_v38 = vadd.f32 %v473_v45, %v896_v31  ;;  %v483_v43 = vadd.f32 %v482_v28, %v405_v7  ;;  %700 = vmatmul.msk.f32.vlgmr.msra.gmra.mxu2 %vm214_vm1, %v978_v3  ;;  %v1024_v31 = vld [vmem:[#allocation2 + $0x1b0] sm:$0xff]  ;;  %v1028_v57 = vmul.f32 %v185_v10, %v185_v10  ;;  %v154_v7 = vld [vmem:[#allocation2 + $0x28] sm:$0xff] }
  0x24   :  { %292 = vmatpush.msrb.mxu1 %v160_v44  ;;  %71 = vmatpush.msra.mxu0 %v41_v34  ;;  %v1019_v34 = vmul.f32 %v193_v54, %v193_v54  ;;  %v1021_v44 = vmul.f32 %v194_v59, %v194_v59  ;;  %v102_v53 = vadd.f32 %v101_v23, %v100_v15  ;;  %v162_v54 = vld [vmem:[#allocation2 + $0x68] sm:$0xff]  ;;  %v1039_v59 = vld [vmem:[#allocation2 + $0x178] sm:$0xff]  ;;  %v187_v10 = vld [vmem:[#allocation2 + $0x130] sm:$0xff] }
  0x25   :  { %v484_v56 = vadd.f32 %v483_v43, %v413_v18  ;;  %701 = vmatmul.msk.f32.vlgmr.msra.gmra.mxu3 %vm214_vm1, %v978_v3  ;;  %v1035_v14 = vmul.f32 %v186_v17, %v186_v17  ;;  %310 = vmatpush.msrb.mxu2 %v177_v30  ;;  %v390_v61 = vmul.f32 %v161_v42, %v161_v42  ;;  %v188_v18 = vld [vmem:[#allocation2 + $0x138] sm:$0xff]  ;;  %v171_v43 = vld [vmem:[#allocation2 + $0xb0] sm:$0xff] }
  0x26   :  { %293 = vmatpush.msrb.mxu1 %v152_v62  ;;  %72 = vmatpush.msra.mxu0 %v40_v55  ;;  %v105_v55 = vsel %vm93_vm0, %v930_v60, 0.0  ;;  %v391_v62 = vmul.f32 %v162_v54, %v162_v54  ;;  %v104_v63 = vadd.f32 %v103_v25, %v102_v53  ;;  %v398_v49 = vmul.f32 %v169_v52, %v169_v52  ;;  %v56_v60 = vld [vmem:[%s1327_s0] sm:$0xf]  ;;  %v180_v15 = vld [vmem:[#allocation2 + $0xf8] sm:$0xff] }
  0x27   :  { %330 = vmatpush.msrb.mxu3 %v178_v27  ;;  %v485_v1 = vadd.f32 %v484_v56, %v942_v22  ;;  %311 = vmatpush.msrb.mxu2 %v169_v52  ;;  %v399_v50 = vmul.f32 %v170_v21, %v170_v21  ;;  %v382_v11 = vmul.f32 %v153_v5, %v153_v5  ;;  %v163_v52 = vld [vmem:[#allocation2 + $0x70] sm:$0xff]  ;;  %v164_v53 = vld [vmem:[#allocation2 + $0x78] sm:$0xff] }
  0x28   :  { %366 = vmatpush.msra.mxu1 %v993_v37  ;;  %346 = vmatpush.msrb.mxu0 %v1006_v39  ;;  %v383_v22 = vmul.f32 %v154_v7, %v154_v7  ;;  %v106_v12 = vadd.f32 %v105_v55, %v104_v63  ;;  %v406_v17 = vmul.f32 %v177_v30, %v177_v30  ;;  %v111_v30 = vsel %vm93_vm0, %v901_v35, 0.0  ;;  %v156_v63 = vld [vmem:[#allocation2 + $0x38] sm:$0xff] }
  0x29   :  { %331 = vmatpush.msrb.mxu3 %v170_v21  ;;  %v486_v13 = vadd.f32 %v485_v1, %v933_v16  ;;  %v407_v24 = vmul.f32 %v178_v27, %v178_v27  ;;  %73 = vmatmul.f32.vlgmr.msra.gmra.mxu0 %v56_v60  ;;  %v494_v47 = vadd.f32 %v390_v61, %v382_v11  ;;  %v113_v55 = vsel %vm93_vm0, %v892_v29, 0.0 }
  0x2a   :  { %347 = vmatpush.msrb.mxu0 %v1024_v31  ;;  %367 = vmatpush.msra.mxu1 %v1026_v48  ;;  %v507_v45 = vadd.f32 %v391_v62, %v383_v22  ;;  %v108_v28 = vadd.f32 %v107_v8, %v106_v12  ;;  %v408_v16 = vmul.f32 %v179_v26, %v179_v26 }
  0x2b   :  { %312 = vmatpush.msrb.mxu2 %v161_v42  ;;  %v1055_v23 = vadd.f32 %v486_v13, %v925_v51  ;;  %332 = vmatpush.msrb.mxu3 %v162_v54  ;;  %v495_v40 = vadd.f32 %v494_v47, %v398_v49  ;;  %v400_v25 = vmul.f32 %v171_v43, %v171_v43  ;;  %v172_v51 = vld [vmem:[#allocation2 + $0xb8] sm:$0xff]  ;;  %v155_v54 = vld [vmem:[#allocation2 + $0x30] sm:$0xff] }
  0x2c   :  { %348 = vmatpush.msrb.mxu0 %v1037_v58  ;;  %368 = vmatpush.msra.mxu1 %v1039_v59  ;;  %v508_v27 = vadd.f32 %v507_v45, %v399_v50  ;;  %v110_v56 = vadd.f32 %v109_v19, %v108_v28  ;;  %v392_v21 = vmul.f32 %v163_v52, %v163_v52 }
  0x2d   :  { %313 = vmatpush.msrb.mxu2 %v153_v5  ;;  %702 = vmatmul.msk.f32.vlgmr.msrb.gmra.mxu1 %vm214_vm1, %v978_v3  ;;  %v393_v42 = vmul.f32 %v164_v53, %v164_v53  ;;  %v496_v35 = vadd.f32 %v495_v40, %v406_v17  ;;  %v384_v62 = vmul.f32 %v155_v54, %v155_v54 }
  0x2e   :  { %349 = vmatpush.msrb.mxu0 %v187_v10  ;;  %369 = vmatpush.msra.mxu1 %v188_v18  ;;  %v509_v61 = vadd.f32 %v508_v27, %v407_v24  ;;  %v112_v1 = vadd.f32 %v111_v30, %v110_v56  ;;  %v401_v49 = vmul.f32 %v172_v51, %v172_v51 }
  0x2f   :  { %333 = vmatpush.msrb.mxu3 %v154_v7  ;;  %703 = vmatmul.msk.f32.vlgmr.msrb.gmra.mxu2 %vm214_vm1, %v978_v3  ;;  %v385_v60 = vmul.f32 %v156_v63, %v156_v63  ;;  %v497_v5 = vadd.f32 %v496_v35, %v1028_v57  ;;  %v520_v29 = vadd.f32 %v392_v21, %v384_v62 }
  0x30   :  { %350 = vmatpush.msrb.mxu0 %v179_v26  ;;  %370 = vmatpush.msra.mxu1 %v180_v15  ;;  %v510_v7 = vadd.f32 %v509_v61, %v1035_v14  ;;  %v114_v8 = vadd.f32 %v113_v55, %v112_v1  ;;  %v416_v50 = vmul.f32 %v187_v10, %v187_v10  ;;  %v488_v55 = vrot.slane %v1055_v23, 4 }
  0x31   :  { %704 = vmatmul.msk.f32.vlgmr.msrb.gmra.mxu3 %vm214_vm1, %v978_v3  ;;  %v409_v11 = vmul.f32 %v180_v15, %v180_v15  ;;  %v533_v22 = vadd.f32 %v393_v42, %v385_v60  ;;  %v498_v12 = vadd.f32 %v497_v5, %v1019_v34  ;;  %v521_v17 = vadd.f32 %v520_v29, %v400_v25 }
  0x32   :  { %351 = vmatpush.msrb.mxu0 %v171_v43  ;;  %371 = vmatpush.msra.mxu1 %v172_v51  ;;  %v511_v13 = vadd.f32 %v510_v7, %v1021_v44  ;;  %v424_v19 = vmul.f32 %v1037_v58, %v1037_v58  ;;  %v417_v57 = vmul.f32 %v188_v18, %v188_v18 }
  0x33   :  { %v534_v24 = vadd.f32 %v533_v22, %v401_v49  ;;  %v499_v14 = vadd.f32 %v498_v12, %v1004_v32  ;;  %v522_v10 = vadd.f32 %v521_v17, %v408_v16  ;;  %v425_v34 = vmul.f32 %v1039_v59, %v1039_v59 }
  0x34   :  { %352 = vmatpush.msrb.mxu0 %v163_v52  ;;  %372 = vmatpush.msra.mxu1 %v164_v53  ;;  %v512_v47 = vadd.f32 %v511_v13, %v1017_v33  ;;  %v432_v44 = vmul.f32 %v1024_v31, %v1024_v31  ;;  %v433_v18 = vmul.f32 %v1026_v48, %v1026_v48 }
  0x35   :  { %v535_v45 = vadd.f32 %v534_v24, %v409_v11  ;;  %v500_v32 = vadd.f32 %v499_v14, %v988_v41  ;;  %v523_v58 = vadd.f32 %v522_v10, %v416_v50  ;;  %v440_v59 = vmul.f32 %v1006_v39, %v1006_v39 }
  0x36   :  { %353 = vmatpush.msrb.mxu0 %v155_v54  ;;  %373 = vmatpush.msra.mxu1 %v156_v63  ;;  %v513_v33 = vadd.f32 %v512_v47, %v1002_v20  ;;  %v88_v31 = vmul.f32 %v878_v9, %v878_v9  ;;  %v89_v41 = vmul.f32 %v873_v6, %v873_v6  ;;  %v449_v6 = vrot.slane %v962_v46, 4 }
  0x37   :  { %705 = vmatmul.msk.f32.vlgmr.msrb.gmra.mxu0 %vm214_vm1, %v978_v3  ;;  %706 = vmatmul.msk.f32.vlgmr.msra.gmra.mxu1 %vm214_vm1, %v978_v3  ;;  %v536_v26 = vadd.f32 %v535_v45, %v417_v57  ;;  %v524_v28 = vadd.f32 %v523_v58, %v424_v19  ;;  %v90_v20 = vmul.f32 %v867_v4, %v867_v4  ;;  %v462_v54 = vrot.slane %v998_v36, 4 }
  0x38   :  { %v115_v48 = vsel %vm93_vm0, %v88_v31, 0.0  ;;  %v91_v30 = vmul.f32 %v861_v2, %v861_v2  ;;  %v117_v39 = vsel %vm93_vm0, %v89_v41, 0.0  ;;  %v92_v27 = vmul.f32 %v856_v0, %v856_v0 }
  0x39   :  { %v537_v16 = vadd.f32 %v536_v26, %v425_v34  ;;  %v525_v15 = vadd.f32 %v524_v28, %v432_v44  ;;  %v116_v40 = vadd.f32 %v115_v48, %v114_v8  ;;  %v119_v25 = vsel %vm93_vm0, %v90_v20, 0.0 }
  0x3a   :  { %v121_v52 = vsel %vm93_vm0, %v91_v30, 0.0  ;;  %v123_v4 = vsel %vm93_vm0, %v92_v27, 0.0  ;;  %v450_v56 = vadd.f32 %v449_v6, %v962_v46  ;;  %v475_v0 = vrot.slane %v1009_v38, 4 }
  0x3b   :  { %v538_v43 = vadd.f32 %v537_v16, %v433_v18  ;;  %v526_v3 = vadd.f32 %v525_v15, %v440_v59  ;;  %v118_v9 = vadd.f32 %v117_v39, %v116_v40  ;;  %v463_v61 = vadd.f32 %v462_v54, %v998_v36 }
  0x3c   :  { %v451_v21 = vrot.slane %v450_v56, 2  ;;  %v441_v63 = vmul.f32 %v993_v37, %v993_v37  ;;  %v476_v1 = vadd.f32 %v475_v0, %v1009_v38  ;;  %v489_v46 = vadd.f32 %v488_v55, %v1055_v23 }
  0x3d   :  { %v120_v53 = vadd.f32 %v119_v25, %v118_v9  ;;  %v464_v60 = vrot.slane %v463_v61, 2  ;;  %v501_v50 = vrot.slane %v500_v32, 4  ;;  %v514_v12 = vrot.slane %v513_v33, 4 }
  0x3e   :  { %v452_v35 = vadd.f32 %v451_v21, %v450_v56  ;;  %v477_v7 = vrot.slane %v476_v1, 2  ;;  %v539_v29 = vadd.f32 %v538_v43, %v441_v63  ;;  %v490_v8 = vrot.slane %v489_v46, 2 }
  0x3f   :  { %v122_v51 = vadd.f32 %v121_v52, %v120_v53  ;;  %v465_v22 = vadd.f32 %v464_v60, %v463_v61  ;;  %v527_v36 = vrot.slane %v526_v3, 4  ;;  %v502_v37 = vadd.f32 %v501_v50, %v500_v32 }
  0x40   :  { %v453_v49 = vrot.slane %v452_v35, 1  ;;  %v478_v17 = vadd.f32 %v477_v7, %v476_v1  ;;  %v540_v19 = vrot.slane %v539_v29, 4  ;;  %v491_v57 = vadd.f32 %v490_v8, %v489_v46 }
  0x41   :  { %v124_v2 = vadd.f32 %v123_v4, %v122_v51  ;;  %v466_v38 = vrot.slane %v465_v22, 1  ;;  %v515_v23 = vadd.f32 %v514_v12, %v513_v33  ;;  %v528_v47 = vadd.f32 %v527_v36, %v526_v3 }
  0x42   :  { %v454_v11 = vadd.f32 %v453_v49, %v452_v35  ;;  %v479_v10 = vrot.slane %v478_v17, 1  ;;  %v541_v34 = vadd.f32 %v540_v19, %v539_v29  ;;  %v492_v45 = vrot.slane %v491_v57, 1 }
  0x43   :  { %v125_v42 = vrot.slane %v124_v2, 4  ;;  %v503_v44 = vrot.slane %v502_v37, 2  ;;  %v467_v58 = vadd.f32 %v466_v38, %v465_v22  ;;  %v516_v18 = vrot.slane %v515_v23, 2 }
  0x44   :  { %v1114_v24 = vadd.f32 1e-06, %v454_v11  ;;  %v529_v59 = vrot.slane %v528_v47, 2  ;;  %v480_v28 = vadd.f32 %v479_v10, %v478_v17  ;;  %v542_v16 = vrot.slane %v541_v34, 2  ;;  %v642_v10 = vld [vmem:[%s1331_s4] sm:$0xff] }
  0x45   :  { %v126_v62 = vadd.f32 %v125_v42, %v124_v2  ;;  %v493_v15 = vadd.f32 %v492_v45, %v491_v57  ;;  %v504_v32 = vadd.f32 %v503_v44, %v502_v37  ;;  %v1117_v43 = vadd.f32 1e-06, %v467_v58 }
  0x46   :  { %713 = vrsqrt.f32 %v1114_v24  ;;  %v517_v31 = vadd.f32 %v516_v18, %v515_v23  ;;  %v530_v3 = vadd.f32 %v529_v59, %v528_v47  ;;  %v1123_v20 = vadd.f32 1e-06, %v480_v28 }
  0x47   :  { %v127_v5 = vrot.slane %v126_v62, 2  ;;  %v543_v48 = vadd.f32 %v542_v16, %v541_v34  ;;  %v1125_v30 = vadd.f32 1e-06, %v493_v15  ;;  %v505_v39 = vrot.slane %v504_v32, 1 }
  0x48   :  { %715 = vrsqrt.f32 %v1117_v43  ;;  %v518_v40 = vrot.slane %v517_v31, 1  ;;  %v531_v25 = vrot.slane %v530_v3, 1  ;;  %vm560_vm2 = vweird.f32 %v1114_v24 }
  0x49   :  { %v128_v13 = vadd.f32 %v127_v5, %v126_v62  ;;  %v544_v9 = vrot.slane %v543_v48, 1  ;;  %v506_v52 = vadd.f32 %v505_v39, %v504_v32  ;;  %vm570_vm7 = vweird.f32 %v1117_v43 }
  0x4a   :  { %v519_v6 = vadd.f32 %v518_v40, %v517_v31  ;;  %v532_v4 = vadd.f32 %v531_v25, %v530_v3  ;;  %vm580_vm9 = vweird.f32 %v1123_v20  ;;  %vm590_vm12 = vweird.f32 %v1125_v30 }
  0x4b   :  { %v129_v14 = vrot.slane %v128_v13, 1  ;;  %v545_v51 = vadd.f32 %v544_v9, %v543_v48  ;;  %v1138_v21 = vadd.f32 1e-06, %v506_v52 }
  0x4c   :  { %v1121_v41 = vpop.eup %713  ;;  %v1142_v54 = vadd.f32 1e-06, %v519_v6  ;;  %v1148_v61 = vadd.f32 1e-06, %v532_v4  ;;  %v643_v6 = vld [vmem:[%s1331_s4 + $0x8] sm:$0xff] }
  0x4d   :  { %v130_v26 = vadd.f32 %v129_v14, %v128_v13  ;;  %v555_v27 = vmul.f32 %v1121_v41, %v1114_v24  ;;  %v1152_v63 = vadd.f32 1e-06, %v545_v51  ;;  %vm561_vm3 = vweird.f32 %v1121_v41 }
  0x4e   :  { %v1134_v56 = vpop.eup %715  ;;  %vm1173_vm4 = vmor %vm560_vm2, %vm561_vm3  ;;  %vm600_vm1 = vweird.f32 %v1138_v21  ;;  %vm610_vm3 = vweird.f32 %v1142_v54 }
  0x4f   :  { %v1119_v33 = vadd.f32 1e-06, %v130_v26  ;;  %v556_v53 = vmul.f32 %v1121_v41, %v555_v27  ;;  %v565_v35 = vmul.f32 %v1134_v56, %v1117_v43  ;;  %vm571_vm8 = vweird.f32 %v1134_v56 }
  0x50   :  { %vm1213_vm14 = vmor %vm570_vm7, %vm571_vm8 }
  0x51   :  { %717 = vrsqrt.f32 %v1119_v33  ;;  %v557_v55 = vmul.f32 0.5, %v556_v53  ;;  %v566_v60 = vmul.f32 %v1134_v56, %v565_v35  ;;  %vm138_vm5 = vweird.f32 %v1119_v33 }
  0x52   :  { %719 = vrsqrt.f32 %v1123_v20 }
  0x53   :  { %721 = vrsqrt.f32 %v1125_v30  ;;  %v558_v49 = vsub.f32 1.5, %v557_v55  ;;  %v567_v11 = vmul.f32 0.5, %v566_v60 }
  0x54   :  { %723 = vrsqrt.f32 %v1138_v21 }
  0x55   :  { %725 = vrsqrt.f32 %v1142_v54  ;;  %v559_v50 = vmul.f32 %v1121_v41, %v558_v49  ;;  %v568_v24 = vsub.f32 1.5, %v567_v11 }
  0x56   :  { %727 = vrsqrt.f32 %v1148_v61 }
  0x57   :  { %v1136_v2 = vpop.eup %717  ;;  %729 = vrsqrt.f32 %v1152_v63  ;;  %v563_v37 = vsel %vm1173_vm4, %v1121_v41, %v559_v50  ;;  %v569_v26 = vmul.f32 %v1134_v56, %v568_v24 }
  0x58   :  { %v1140_v42 = vpop.eup %719  ;;  %v133_v62 = vmul.f32 %v1136_v2, %v1119_v33  ;;  %vm139_vm6 = vweird.f32 %v1136_v2 }
  0x59   :  { %v1144_v0 = vpop.eup %721  ;;  %v575_v1 = vmul.f32 %v1140_v42, %v1123_v20  ;;  %vm581_vm10 = vweird.f32 %v1140_v42  ;;  %vm1205_vm11 = vmor %vm138_vm5, %vm139_vm6  ;;  %v573_v39 = vsel %vm1213_vm14, %v1134_v56, %v569_v26  ;;  %vm620_vm5 = vweird.f32 %v1148_v61 }
  0x5a   :  { %v585_v46 = vmul.f32 %v1144_v0, %v1125_v30  ;;  %v134_v5 = vmul.f32 %v1136_v2, %v133_v62  ;;  %v1168_v8 = vpop.eup %723  ;;  %vm591_vm13 = vweird.f32 %v1144_v0  ;;  %vm1220_vm15 = vmor %vm580_vm9, %vm581_vm10  ;;  %vm630_vm9 = vweird.f32 %v1152_v63 }
  0x5b   :  { %v576_v7 = vmul.f32 %v1140_v42, %v575_v1  ;;  %v1171_v22 = vpop.eup %725  ;;  %v595_v38 = vmul.f32 %v1168_v8, %v1138_v21  ;;  %vm1225_vm0 = vmor %vm590_vm12, %vm591_vm13  ;;  %vm601_vm2 = vweird.f32 %v1168_v8  ;;  %vm147_vm12 = vcmask 125952  }
  0x5c   :  { %v586_v29 = vmul.f32 %v1144_v0, %v585_v46  ;;  %v135_v13 = vmul.f32 0.5, %v134_v5  ;;  %v1177_v36 = vpop.eup %727  ;;  %v605_v14 = vmul.f32 %v1171_v22, %v1142_v54  ;;  %vm611_vm4 = vweird.f32 %v1171_v22  ;;  %v645_v5 = vld [vmem:[%s1331_s4 + $0x18] sm:$0xff] }
  0x5d   :  { %v577_v17 = vmul.f32 0.5, %v576_v7  ;;  %v1179_v19 = vpop.eup %729  ;;  %v615_v45 = vmul.f32 %v1177_v36, %v1148_v61  ;;  %v596_v59 = vmul.f32 %v1168_v8, %v595_v38  ;;  %vm621_vm6 = vweird.f32 %v1177_v36  ;;  %vm1277_vm13 = vmor %vm610_vm3, %vm611_vm4 }
  0x5e   :  { %v587_v57 = vmul.f32 0.5, %v586_v29  ;;  %v136_v23 = vsub.f32 1.5, %v135_v13  ;;  %v625_v44 = vmul.f32 %v1179_v19, %v1152_v63  ;;  %v606_v15 = vmul.f32 %v1171_v22, %v605_v14  ;;  %vm1287_vm14 = vmor %vm620_vm5, %vm621_vm6 }
  0x5f   :  { %v578_v34 = vsub.f32 1.5, %v577_v17  ;;  %v616_v31 = vmul.f32 %v1177_v36, %v615_v45  ;;  %v597_v30 = vmul.f32 0.5, %v596_v59  ;;  %vm631_vm10 = vweird.f32 %v1179_v19 }
  0x60   :  { %v588_v18 = vsub.f32 1.5, %v587_v57  ;;  %v137_v32 = vmul.f32 %v1136_v2, %v136_v23  ;;  %v626_v33 = vmul.f32 %v1179_v19, %v625_v44  ;;  %v607_v40 = vmul.f32 0.5, %v606_v15 }
  0x61   :  { %v579_v3 = vmul.f32 %v1140_v42, %v578_v34  ;;  %v617_v25 = vmul.f32 0.5, %v616_v31  ;;  %v813_v7 = vmov 0.0   ;;  %v646_v34 = vld [vmem:[%s1331_s4 + $0x20] sm:$0xff] }
  0x62   :  { %v589_v20 = vmul.f32 %v1144_v0, %v588_v18  ;;  %v141_v27 = vsel %vm1205_vm11, %v1136_v2, %v137_v32  ;;  %v627_v9 = vmul.f32 0.5, %v626_v33  ;;  %v598_v2 = vsub.f32 1.5, %v597_v30  ;;  %vm1267_vm11 = vmor %vm600_vm1, %vm601_vm2 }
  0x63   :  { %v583_v53 = vsel %vm1220_vm15, %v1140_v42, %v579_v3  ;;  %v644_v42 = vld [vmem:[%s1331_s4 + $0x10] sm:$0xff]  ;;  %v608_v62 = vsub.f32 1.5, %v607_v40  ;;  %v618_v46 = vsub.f32 1.5, %v617_v25  ;;  %vm1296_vm15 = vmor %vm630_vm9, %vm631_vm10 }
  0x64   :  { %v593_v4 = vsel %vm1225_vm0, %v1144_v0, %v589_v20  ;;  %v628_v49 = vsub.f32 1.5, %v627_v9  ;;  %v599_v17 = vmul.f32 %v1168_v8, %v598_v2 }
  0x65   :  { %v609_v57 = vmul.f32 %v1171_v22, %v608_v62  ;;  %v619_v24 = vmul.f32 %v1177_v36, %v618_v46 }
  0x66   :  { %v629_v54 = vmul.f32 %v1179_v19, %v628_v49  ;;  %v603_v61 = vsel %vm1267_vm11, %v1168_v8, %v599_v17  ;;  %v647_v8 = vld [vmem:[%s1331_s4 + $0x28] sm:$0xff] }
  0x67   :  { %v613_v14 = vsel %vm1277_vm13, %v1171_v22, %v609_v57 }
  0x68   :  { %v633_v63 = vsel %vm1296_vm15, %v1179_v19, %v629_v54  ;;  %v649_v19 = vld [vmem:[%s1331_s4 + $0x38] sm:$0xff] }
  0x9e   :  { %v235_v47 = vpop.f32.mrf.mxu1 }
  0x9f   :  { %v634_v58 = vmul.f32 %v563_v37, %v235_v47  ;;  %v623_v47 = vsel %vm1287_vm14, %v1177_v36, %v619_v24  ;;  %v648_v36 = vld [vmem:[%s1331_s4 + $0x30] sm:$0xff] }
  0xa1   :  { %v650_v28 = vmul.f32 %v642_v10, %v634_v58 }
  0xa3   :  { %658 = vst [vmem:[#allocation6] sm:$0xff] %v650_v28 }
  0xa6   :  { %v255_v52 = vpop.f32.mrf.mxu2  ;;  %v74_v56 = vpop.f32.mrf.mxu0 }
  0xa7   :  { %v635_v51 = vmul.f32 %v573_v39, %v255_v52  ;;  %v142_v55 = vmul.f32 %v141_v27, %v74_v56 }
  0xa8   :  { %v275_v35 = vpop.f32.mrf.mxu3 }
  0xa9   :  { %v651_v0 = vmul.f32 %v643_v6, %v635_v51  ;;  %v636_v1 = vmul.f32 %v583_v53, %v275_v35  ;;  %vm143_vm7 = vcmp.gt.f32.partialorder %v142_v55, 0.0  ;;  %vm144_vm8 = vcmp.lt.f32.partialorder %v142_v55, 0.0 }
  0xaa   :  { %v295_v60 = vpop.f32.mrf.mxu1  ;;  %v145_v29 = vsel %vm144_vm8, -1.0, %v813_v7 }
  0xab   :  { %659 = vst [vmem:[#allocation6 + $0x8] sm:$0xff] %v651_v0  ;;  %v652_v50 = vmul.f32 %v644_v42, %v636_v1  ;;  %v637_v11 = vmul.f32 %v593_v4, %v295_v60  ;;  %v146_v13 = vsel %vm143_vm7, 1.0, %v145_v29 }
  0xac   :  { %148 = vst.msk [vmem:[#allocation5] sm:$0xf] %vm147_vm12, %v146_v13 }
  0xad   :  { %660 = vst [vmem:[#allocation6 + $0x10] sm:$0xff] %v652_v50  ;;  %v653_v21 = vmul.f32 %v645_v5, %v637_v11  ;;  %676 = dma.vmem_to_hbm [thread:$0]  %s672_s18, 64, %s674_s21, [#allocation4]  }
  0xaf   :  { %661 = vst [vmem:[#allocation6 + $0x18] sm:$0xff] %v653_v21 }
  0xb2   :  { %v315_v10 = vpop.f32.mrf.mxu2 }
  0xb3   :  { %v638_v44 = vmul.f32 %v603_v61, %v315_v10 }
  0xb4   :  { %v335_v45 = vpop.f32.mrf.mxu3  ;;  %v355_v58 = vpop.f32.mrf.mxu0 }
  0xb5   :  { %v639_v22 = vmul.f32 %v613_v14, %v335_v45  ;;  %v375_v18 = vpop.f32.mrf.mxu1  ;;  %v640_v26 = vmul.f32 %v623_v47, %v355_v58  ;;  %v654_v28 = vmul.f32 %v646_v34, %v638_v44 }
  0xb6   :  { %v641_v59 = vmul.f32 %v633_v63, %v375_v18 }
  0xb7   :  { %v655_v16 = vmul.f32 %v647_v8, %v639_v22  ;;  %v656_v15 = vmul.f32 %v648_v36, %v640_v26  ;;  %662 = vst [vmem:[#allocation6 + $0x20] sm:$0xff] %v654_v28 }
  0xb8   :  { %v657_v32 = vmul.f32 %v649_v19, %v641_v59 }
  0xb9   :  { %663 = vst [vmem:[#allocation6 + $0x28] sm:$0xff] %v655_v16 }
  0xba   :  { %664 = vst [vmem:[#allocation6 + $0x30] sm:$0xff] %v656_v15 }
  0xbb   :  { %665 = vst [vmem:[#allocation6 + $0x38] sm:$0xff] %v657_v32 }
  0xbc   :  { %687 = dma.vmem_to_hbm [thread:$0]  %s683_s3, 1024, %s685_s10, [#allocation7]  }
  0xbd   :  { %805 = dma.done.wait [#allocation4], 64  }
  0xbe   :  { %806 = vsyncadd [#allocation4], 4294967232 }
  0xbf   :  { %807 = dma.done.wait [#allocation7], 1024  }
  0xc0   :  { %808 = vsyncadd [#allocation7], 4294966272 }
  0xc1   :  { %696 = vsyncpa [#allocation3], 1 }
  0xc2   :  { %697 = vsyncpa [#allocation4], 1 }
  0xc3   :  { %698 = vsyncpa [#allocation7], 1 }

</bundles_post_ra>
